<compile_context>
chip_gen: v6e
topology: v6e:2x2x1
jax: 0.10.0
libtpu: 0.0.40
codegen_flags: <defaults>
</compile_context>

<pallas_src>
import jax
import jax.numpy as jnp
from jax.experimental import pallas as pl
from jax.experimental.pallas import tpu as pltpu

# --- Network dimensions (fixed by the PyTorch module: Linear(4,5), (5,6), (6,1)) ---
IN_DIM, H1, H2, OUT_DIM = 4, 5, 6, 1

# --- Offsets into the packed parameter buffer (weights stored [in, out], row-major) ---
W1_OFF = 0
B1_OFF = W1_OFF + IN_DIM * H1        # 20
W2_OFF = B1_OFF + H1                 # 25
B2_OFF = W2_OFF + H1 * H2            # 55
W3_OFF = B2_OFF + H2                 # 61
B3_OFF = W3_OFF + H2 * OUT_DIM       # 67
N_PARAMS = B3_OFF + OUT_DIM          # 68


def mlp_kernel(params_ref, x_ref, o_ref):
    """params_ref: SMEM f32[68]; x_ref: VMEM [IN_DIM, TILE_B]; o_ref: VMEM [1, TILE_B]."""
    x = x_ref[...]                                   # [IN_DIM, TILE_B]
    rows = [x[k:k + 1, :] for k in range(IN_DIM)]    # each [1, TILE_B], batch on lanes

    def dense_sigmoid(in_rows, k_dim, n_dim, w_off, b_off):
        # y[n, :] = sigmoid( sum_k w[k, n] * in_rows[k]  +  b[n] )
        # Fully unrolled VPU multiply-accumulate; scalars come from SMEM and
        # are splatted (no per-layer MXU pass, no broadcast materialization).
        out_rows = []
        for n in range(n_dim):
            acc = in_rows[0] * params_ref[w_off + n]
            for k in range(1, k_dim):
                acc = acc + in_rows[k] * params_ref[w_off + k * n_dim + n]
            out_rows.append(jax.nn.sigmoid(acc + params_ref[b_off + n]))
        return out_rows

    h = dense_sigmoid(rows, IN_DIM, H1, W1_OFF, B1_OFF)   # 5 x [1, TILE_B]
    h = dense_sigmoid(h, H1, H2, W2_OFF, B2_OFF)          # 6 x [1, TILE_B]
    h = dense_sigmoid(h, H2, OUT_DIM, W3_OFF, B3_OFF)     # 1 x [1, TILE_B]
    o_ref[...] = h[0]                                     # lane-dense store


def pack_params(params):
    """Flatten (w1, b1, w2, b2, w3, b3) into a single f32[68] buffer."""
    flat = jnp.concatenate([jnp.ravel(p) for p in params]).astype(jnp.float32)
    assert flat.shape == (N_PARAMS,)
    return flat


def mlp_forward(x, params, *, tile_b=1024):
    """x: [B, 4] f32 -> [B, 1] f32, matching the PyTorch MLP forward."""
    flat_params = pack_params(params)

    B = x.shape[0]
    # Lane tile: at least 128, no larger than needed for this batch.
    tile_b = max(128, min(tile_b, pl.cdiv(B, 128) * 128))
    b_padded = pl.cdiv(B, tile_b) * tile_b
    num_tiles = b_padded // tile_b

    # Layout plumbing outside the kernel: pad batch, put batch on the lane axis.
    x_t = jnp.pad(x.astype(jnp.float32), ((0, b_padded - B), (0, 0))).T  # [IN_DIM, Bp]

    out_t = pl.pallas_call(
        mlp_kernel,
        out_shape=jax.ShapeDtypeStruct((OUT_DIM, b_padded), jnp.float32),
        grid=(num_tiles,),
        in_specs=[
            pl.BlockSpec(memory_space=pltpu.MemorySpace.SMEM),       # packed params
            pl.BlockSpec((IN_DIM, tile_b), lambda i: (0, i)),        # x tile
        ],
        out_specs=pl.BlockSpec((OUT_DIM, tile_b), lambda i: (0, i)),  # out tile
        compiler_params=pltpu.CompilerParams(
            dimension_semantics=("parallel",)),                      # v7x megacore
    )(flat_params, x_t)

    return out_t.T[:B]                                               # [B, 1]


def init_params(key, in_dim=IN_DIM, h1=H1, h2=H2, out_dim=OUT_DIM):
    """Deterministic init mimicking PyTorch nn.Linear default U[-1/sqrt(fan_in), 1/sqrt(fan_in)]."""
    ks = jax.random.split(key, 6)

    def lin(kw, kb, fan_in, fan_out):
        bound = 1.0 / jnp.sqrt(fan_in)
        w = jax.random.uniform(kw, (fan_in, fan_out), jnp.float32, -bound, bound)
        b = jax.random.uniform(kb, (fan_out,), jnp.float32, -bound, bound)
        return w, b

    w1, b1 = lin(ks[0], ks[1], in_dim, h1)
    w2, b2 = lin(ks[2], ks[3], h1, h2)
    w3, b3 = lin(ks[4], ks[5], h2, out_dim)
    return (w1, b1, w2, b2, w3, b3)


def mlp_reference(x, params):
    w1, b1, w2, b2, w3, b3 = params
    h = jax.nn.sigmoid(x @ w1 + b1)
    h = jax.nn.sigmoid(h @ w2 + b2)
    return jax.nn.sigmoid(h @ w3 + b3)


if __name__ == "__main__":
    key = jax.random.PRNGKey(0)
    kx, kp, kx2 = jax.random.split(key, 3)

    params = init_params(kp)

    # Small batch (pads to a single 128-lane tile).
    x_small = jax.random.normal(kx, (8, IN_DIM), jnp.float32)
    out_small = jax.block_until_ready(mlp_forward(x_small, params))
    ref_small = mlp_reference(x_small, params)
    assert out_small.shape == (8, 1)
    assert jnp.allclose(out_small, ref_small, atol=1e-5, rtol=1e-5)

    # Larger, non-tile-multiple batch to exercise the parallel grid + padding path.
    x_big = jax.random.normal(kx2, (2304, IN_DIM), jnp.float32)
    out_big = jax.block_until_ready(mlp_forward(x_big, params))
    ref_big = mlp_reference(x_big, params)
    assert out_big.shape == (2304, 1)
    assert jnp.allclose(out_big, ref_big, atol=1e-5, rtol=1e-5)

    print("KERNEL_OK")
</pallas_src>

<mosaic_0001>
module attributes {stable_mosaic.version = 11 : i64} {
  func.func @mlp_kernel(%arg0: i32, %arg1: memref<68xf32, #tpu.memory_space<smem>>, %arg2: memref<4x128xf32, #tpu.memory_space<vmem>>, %arg3: memref<1x128xf32, #tpu.memory_space<vmem>>) attributes {dimension_semantics = [#tpu.dimension_semantics<parallel>], iteration_bounds = array<i64: 1>, scalar_prefetch = 0 : i64, scratch_operands = 0 : i64, tpu.core_type = #tpu.core_type<tc>, window_params = [{transform_indices = @transform_0, window_bounds = array<i64: 68>}, {transform_indices = @transform_1, window_bounds = array<i64: 4, 128>}, {transform_indices = @transform_2, window_bounds = array<i64: 1, 128>}]} {
    %c0 = arith.constant 0 : index
    %c0_0 = arith.constant 0 : index
    %0 = vector.load %arg2[%c0, %c0_0] : memref<4x128xf32, #tpu.memory_space<vmem>>, vector<4x128xf32>
    %1 = vector.extract_strided_slice %0 {offsets = [0, 0], sizes = [1, 128], strides = [1, 1]} : vector<4x128xf32> to vector<1x128xf32>
    %2 = vector.extract_strided_slice %0 {offsets = [1, 0], sizes = [1, 128], strides = [1, 1]} : vector<4x128xf32> to vector<1x128xf32>
    %3 = vector.extract_strided_slice %0 {offsets = [2, 0], sizes = [1, 128], strides = [1, 1]} : vector<4x128xf32> to vector<1x128xf32>
    %4 = vector.extract_strided_slice %0 {offsets = [3, 0], sizes = [1, 128], strides = [1, 1]} : vector<4x128xf32> to vector<1x128xf32>
    %c0_1 = arith.constant 0 : index
    %5 = memref.load %arg1[%c0_1] : memref<68xf32, #tpu.memory_space<smem>>
    %6 = vector.broadcast %5 : f32 to vector<1x128xf32>
    %7 = arith.mulf %1, %6 : vector<1x128xf32>
    %c5 = arith.constant 5 : index
    %8 = memref.load %arg1[%c5] : memref<68xf32, #tpu.memory_space<smem>>
    %9 = vector.broadcast %8 : f32 to vector<1x128xf32>
    %10 = arith.mulf %2, %9 : vector<1x128xf32>
    %11 = arith.addf %7, %10 : vector<1x128xf32>
    %c10 = arith.constant 10 : index
    %12 = memref.load %arg1[%c10] : memref<68xf32, #tpu.memory_space<smem>>
    %13 = vector.broadcast %12 : f32 to vector<1x128xf32>
    %14 = arith.mulf %3, %13 : vector<1x128xf32>
    %15 = arith.addf %11, %14 : vector<1x128xf32>
    %c15 = arith.constant 15 : index
    %16 = memref.load %arg1[%c15] : memref<68xf32, #tpu.memory_space<smem>>
    %17 = vector.broadcast %16 : f32 to vector<1x128xf32>
    %18 = arith.mulf %4, %17 : vector<1x128xf32>
    %19 = arith.addf %15, %18 : vector<1x128xf32>
    %c20 = arith.constant 20 : index
    %20 = memref.load %arg1[%c20] : memref<68xf32, #tpu.memory_space<smem>>
    %21 = vector.broadcast %20 : f32 to vector<1x128xf32>
    %22 = arith.addf %19, %21 : vector<1x128xf32>
    %23 = arith.negf %22 : vector<1x128xf32>
    %24 = math.exp %23 : vector<1x128xf32>
    %cst = arith.constant 1.000000e+00 : f32
    %25 = vector.broadcast %cst : f32 to vector<1x128xf32>
    %26 = arith.addf %25, %24 : vector<1x128xf32>
    %27 = arith.divf %25, %26 : vector<1x128xf32>
    %c1 = arith.constant 1 : index
    %28 = memref.load %arg1[%c1] : memref<68xf32, #tpu.memory_space<smem>>
    %29 = vector.broadcast %28 : f32 to vector<1x128xf32>
    %30 = arith.mulf %1, %29 : vector<1x128xf32>
    %c6 = arith.constant 6 : index
    %31 = memref.load %arg1[%c6] : memref<68xf32, #tpu.memory_space<smem>>
    %32 = vector.broadcast %31 : f32 to vector<1x128xf32>
    %33 = arith.mulf %2, %32 : vector<1x128xf32>
    %34 = arith.addf %30, %33 : vector<1x128xf32>
    %c11 = arith.constant 11 : index
    %35 = memref.load %arg1[%c11] : memref<68xf32, #tpu.memory_space<smem>>
    %36 = vector.broadcast %35 : f32 to vector<1x128xf32>
    %37 = arith.mulf %3, %36 : vector<1x128xf32>
    %38 = arith.addf %34, %37 : vector<1x128xf32>
    %c16 = arith.constant 16 : index
    %39 = memref.load %arg1[%c16] : memref<68xf32, #tpu.memory_space<smem>>
    %40 = vector.broadcast %39 : f32 to vector<1x128xf32>
    %41 = arith.mulf %4, %40 : vector<1x128xf32>
    %42 = arith.addf %38, %41 : vector<1x128xf32>
    %c21 = arith.constant 21 : index
    %43 = memref.load %arg1[%c21] : memref<68xf32, #tpu.memory_space<smem>>
    %44 = vector.broadcast %43 : f32 to vector<1x128xf32>
    %45 = arith.addf %42, %44 : vector<1x128xf32>
    %46 = arith.negf %45 : vector<1x128xf32>
    %47 = math.exp %46 : vector<1x128xf32>
    %cst_2 = arith.constant 1.000000e+00 : f32
    %48 = vector.broadcast %cst_2 : f32 to vector<1x128xf32>
    %49 = arith.addf %48, %47 : vector<1x128xf32>
    %50 = arith.divf %48, %49 : vector<1x128xf32>
    %c2 = arith.constant 2 : index
    %51 = memref.load %arg1[%c2] : memref<68xf32, #tpu.memory_space<smem>>
    %52 = vector.broadcast %51 : f32 to vector<1x128xf32>
    %53 = arith.mulf %1, %52 : vector<1x128xf32>
    %c7 = arith.constant 7 : index
    %54 = memref.load %arg1[%c7] : memref<68xf32, #tpu.memory_space<smem>>
    %55 = vector.broadcast %54 : f32 to vector<1x128xf32>
    %56 = arith.mulf %2, %55 : vector<1x128xf32>
    %57 = arith.addf %53, %56 : vector<1x128xf32>
    %c12 = arith.constant 12 : index
    %58 = memref.load %arg1[%c12] : memref<68xf32, #tpu.memory_space<smem>>
    %59 = vector.broadcast %58 : f32 to vector<1x128xf32>
    %60 = arith.mulf %3, %59 : vector<1x128xf32>
    %61 = arith.addf %57, %60 : vector<1x128xf32>
    %c17 = arith.constant 17 : index
    %62 = memref.load %arg1[%c17] : memref<68xf32, #tpu.memory_space<smem>>
    %63 = vector.broadcast %62 : f32 to vector<1x128xf32>
    %64 = arith.mulf %4, %63 : vector<1x128xf32>
    %65 = arith.addf %61, %64 : vector<1x128xf32>
    %c22 = arith.constant 22 : index
    %66 = memref.load %arg1[%c22] : memref<68xf32, #tpu.memory_space<smem>>
    %67 = vector.broadcast %66 : f32 to vector<1x128xf32>
    %68 = arith.addf %65, %67 : vector<1x128xf32>
    %69 = arith.negf %68 : vector<1x128xf32>
    %70 = math.exp %69 : vector<1x128xf32>
    %cst_3 = arith.constant 1.000000e+00 : f32
    %71 = vector.broadcast %cst_3 : f32 to vector<1x128xf32>
    %72 = arith.addf %71, %70 : vector<1x128xf32>
    %73 = arith.divf %71, %72 : vector<1x128xf32>
    %c3 = arith.constant 3 : index
    %74 = memref.load %arg1[%c3] : memref<68xf32, #tpu.memory_space<smem>>
    %75 = vector.broadcast %74 : f32 to vector<1x128xf32>
    %76 = arith.mulf %1, %75 : vector<1x128xf32>
    %c8 = arith.constant 8 : index
    %77 = memref.load %arg1[%c8] : memref<68xf32, #tpu.memory_space<smem>>
    %78 = vector.broadcast %77 : f32 to vector<1x128xf32>
    %79 = arith.mulf %2, %78 : vector<1x128xf32>
    %80 = arith.addf %76, %79 : vector<1x128xf32>
    %c13 = arith.constant 13 : index
    %81 = memref.load %arg1[%c13] : memref<68xf32, #tpu.memory_space<smem>>
    %82 = vector.broadcast %81 : f32 to vector<1x128xf32>
    %83 = arith.mulf %3, %82 : vector<1x128xf32>
    %84 = arith.addf %80, %83 : vector<1x128xf32>
    %c18 = arith.constant 18 : index
    %85 = memref.load %arg1[%c18] : memref<68xf32, #tpu.memory_space<smem>>
    %86 = vector.broadcast %85 : f32 to vector<1x128xf32>
    %87 = arith.mulf %4, %86 : vector<1x128xf32>
    %88 = arith.addf %84, %87 : vector<1x128xf32>
    %c23 = arith.constant 23 : index
    %89 = memref.load %arg1[%c23] : memref<68xf32, #tpu.memory_space<smem>>
    %90 = vector.broadcast %89 : f32 to vector<1x128xf32>
    %91 = arith.addf %88, %90 : vector<1x128xf32>
    %92 = arith.negf %91 : vector<1x128xf32>
    %93 = math.exp %92 : vector<1x128xf32>
    %cst_4 = arith.constant 1.000000e+00 : f32
    %94 = vector.broadcast %cst_4 : f32 to vector<1x128xf32>
    %95 = arith.addf %94, %93 : vector<1x128xf32>
    %96 = arith.divf %94, %95 : vector<1x128xf32>
    %c4 = arith.constant 4 : index
    %97 = memref.load %arg1[%c4] : memref<68xf32, #tpu.memory_space<smem>>
    %98 = vector.broadcast %97 : f32 to vector<1x128xf32>
    %99 = arith.mulf %1, %98 : vector<1x128xf32>
    %c9 = arith.constant 9 : index
    %100 = memref.load %arg1[%c9] : memref<68xf32, #tpu.memory_space<smem>>
    %101 = vector.broadcast %100 : f32 to vector<1x128xf32>
    %102 = arith.mulf %2, %101 : vector<1x128xf32>
    %103 = arith.addf %99, %102 : vector<1x128xf32>
    %c14 = arith.constant 14 : index
    %104 = memref.load %arg1[%c14] : memref<68xf32, #tpu.memory_space<smem>>
    %105 = vector.broadcast %104 : f32 to vector<1x128xf32>
    %106 = arith.mulf %3, %105 : vector<1x128xf32>
    %107 = arith.addf %103, %106 : vector<1x128xf32>
    %c19 = arith.constant 19 : index
    %108 = memref.load %arg1[%c19] : memref<68xf32, #tpu.memory_space<smem>>
    %109 = vector.broadcast %108 : f32 to vector<1x128xf32>
    %110 = arith.mulf %4, %109 : vector<1x128xf32>
    %111 = arith.addf %107, %110 : vector<1x128xf32>
    %c24 = arith.constant 24 : index
    %112 = memref.load %arg1[%c24] : memref<68xf32, #tpu.memory_space<smem>>
    %113 = vector.broadcast %112 : f32 to vector<1x128xf32>
    %114 = arith.addf %111, %113 : vector<1x128xf32>
    %115 = arith.negf %114 : vector<1x128xf32>
    %116 = math.exp %115 : vector<1x128xf32>
    %cst_5 = arith.constant 1.000000e+00 : f32
    %117 = vector.broadcast %cst_5 : f32 to vector<1x128xf32>
    %118 = arith.addf %117, %116 : vector<1x128xf32>
    %119 = arith.divf %117, %118 : vector<1x128xf32>
    %c25 = arith.constant 25 : index
    %120 = memref.load %arg1[%c25] : memref<68xf32, #tpu.memory_space<smem>>
    %121 = vector.broadcast %120 : f32 to vector<1x128xf32>
    %122 = arith.mulf %27, %121 : vector<1x128xf32>
    %c31 = arith.constant 31 : index
    %123 = memref.load %arg1[%c31] : memref<68xf32, #tpu.memory_space<smem>>
    %124 = vector.broadcast %123 : f32 to vector<1x128xf32>
    %125 = arith.mulf %50, %124 : vector<1x128xf32>
    %126 = arith.addf %122, %125 : vector<1x128xf32>
    %c37 = arith.constant 37 : index
    %127 = memref.load %arg1[%c37] : memref<68xf32, #tpu.memory_space<smem>>
    %128 = vector.broadcast %127 : f32 to vector<1x128xf32>
    %129 = arith.mulf %73, %128 : vector<1x128xf32>
    %130 = arith.addf %126, %129 : vector<1x128xf32>
    %c43 = arith.constant 43 : index
    %131 = memref.load %arg1[%c43] : memref<68xf32, #tpu.memory_space<smem>>
    %132 = vector.broadcast %131 : f32 to vector<1x128xf32>
    %133 = arith.mulf %96, %132 : vector<1x128xf32>
    %134 = arith.addf %130, %133 : vector<1x128xf32>
    %c49 = arith.constant 49 : index
    %135 = memref.load %arg1[%c49] : memref<68xf32, #tpu.memory_space<smem>>
    %136 = vector.broadcast %135 : f32 to vector<1x128xf32>
    %137 = arith.mulf %119, %136 : vector<1x128xf32>
    %138 = arith.addf %134, %137 : vector<1x128xf32>
    %c55 = arith.constant 55 : index
    %139 = memref.load %arg1[%c55] : memref<68xf32, #tpu.memory_space<smem>>
    %140 = vector.broadcast %139 : f32 to vector<1x128xf32>
    %141 = arith.addf %138, %140 : vector<1x128xf32>
    %142 = arith.negf %141 : vector<1x128xf32>
    %143 = math.exp %142 : vector<1x128xf32>
    %cst_6 = arith.constant 1.000000e+00 : f32
    %144 = vector.broadcast %cst_6 : f32 to vector<1x128xf32>
    %145 = arith.addf %144, %143 : vector<1x128xf32>
    %146 = arith.divf %144, %145 : vector<1x128xf32>
    %c26 = arith.constant 26 : index
    %147 = memref.load %arg1[%c26] : memref<68xf32, #tpu.memory_space<smem>>
    %148 = vector.broadcast %147 : f32 to vector<1x128xf32>
    %149 = arith.mulf %27, %148 : vector<1x128xf32>
    %c32 = arith.constant 32 : index
    %150 = memref.load %arg1[%c32] : memref<68xf32, #tpu.memory_space<smem>>
    %151 = vector.broadcast %150 : f32 to vector<1x128xf32>
    %152 = arith.mulf %50, %151 : vector<1x128xf32>
    %153 = arith.addf %149, %152 : vector<1x128xf32>
    %c38 = arith.constant 38 : index
    %154 = memref.load %arg1[%c38] : memref<68xf32, #tpu.memory_space<smem>>
    %155 = vector.broadcast %154 : f32 to vector<1x128xf32>
    %156 = arith.mulf %73, %155 : vector<1x128xf32>
    %157 = arith.addf %153, %156 : vector<1x128xf32>
    %c44 = arith.constant 44 : index
    %158 = memref.load %arg1[%c44] : memref<68xf32, #tpu.memory_space<smem>>
    %159 = vector.broadcast %158 : f32 to vector<1x128xf32>
    %160 = arith.mulf %96, %159 : vector<1x128xf32>
    %161 = arith.addf %157, %160 : vector<1x128xf32>
    %c50 = arith.constant 50 : index
    %162 = memref.load %arg1[%c50] : memref<68xf32, #tpu.memory_space<smem>>
    %163 = vector.broadcast %162 : f32 to vector<1x128xf32>
    %164 = arith.mulf %119, %163 : vector<1x128xf32>
    %165 = arith.addf %161, %164 : vector<1x128xf32>
    %c56 = arith.constant 56 : index
    %166 = memref.load %arg1[%c56] : memref<68xf32, #tpu.memory_space<smem>>
    %167 = vector.broadcast %166 : f32 to vector<1x128xf32>
    %168 = arith.addf %165, %167 : vector<1x128xf32>
    %169 = arith.negf %168 : vector<1x128xf32>
    %170 = math.exp %169 : vector<1x128xf32>
    %cst_7 = arith.constant 1.000000e+00 : f32
    %171 = vector.broadcast %cst_7 : f32 to vector<1x128xf32>
    %172 = arith.addf %171, %170 : vector<1x128xf32>
    %173 = arith.divf %171, %172 : vector<1x128xf32>
    %c27 = arith.constant 27 : index
    %174 = memref.load %arg1[%c27] : memref<68xf32, #tpu.memory_space<smem>>
    %175 = vector.broadcast %174 : f32 to vector<1x128xf32>
    %176 = arith.mulf %27, %175 : vector<1x128xf32>
    %c33 = arith.constant 33 : index
    %177 = memref.load %arg1[%c33] : memref<68xf32, #tpu.memory_space<smem>>
    %178 = vector.broadcast %177 : f32 to vector<1x128xf32>
    %179 = arith.mulf %50, %178 : vector<1x128xf32>
    %180 = arith.addf %176, %179 : vector<1x128xf32>
    %c39 = arith.constant 39 : index
    %181 = memref.load %arg1[%c39] : memref<68xf32, #tpu.memory_space<smem>>
    %182 = vector.broadcast %181 : f32 to vector<1x128xf32>
    %183 = arith.mulf %73, %182 : vector<1x128xf32>
    %184 = arith.addf %180, %183 : vector<1x128xf32>
    %c45 = arith.constant 45 : index
    %185 = memref.load %arg1[%c45] : memref<68xf32, #tpu.memory_space<smem>>
    %186 = vector.broadcast %185 : f32 to vector<1x128xf32>
    %187 = arith.mulf %96, %186 : vector<1x128xf32>
    %188 = arith.addf %184, %187 : vector<1x128xf32>
    %c51 = arith.constant 51 : index
    %189 = memref.load %arg1[%c51] : memref<68xf32, #tpu.memory_space<smem>>
    %190 = vector.broadcast %189 : f32 to vector<1x128xf32>
    %191 = arith.mulf %119, %190 : vector<1x128xf32>
    %192 = arith.addf %188, %191 : vector<1x128xf32>
    %c57 = arith.constant 57 : index
    %193 = memref.load %arg1[%c57] : memref<68xf32, #tpu.memory_space<smem>>
    %194 = vector.broadcast %193 : f32 to vector<1x128xf32>
    %195 = arith.addf %192, %194 : vector<1x128xf32>
    %196 = arith.negf %195 : vector<1x128xf32>
    %197 = math.exp %196 : vector<1x128xf32>
    %cst_8 = arith.constant 1.000000e+00 : f32
    %198 = vector.broadcast %cst_8 : f32 to vector<1x128xf32>
    %199 = arith.addf %198, %197 : vector<1x128xf32>
    %200 = arith.divf %198, %199 : vector<1x128xf32>
    %c28 = arith.constant 28 : index
    %201 = memref.load %arg1[%c28] : memref<68xf32, #tpu.memory_space<smem>>
    %202 = vector.broadcast %201 : f32 to vector<1x128xf32>
    %203 = arith.mulf %27, %202 : vector<1x128xf32>
    %c34 = arith.constant 34 : index
    %204 = memref.load %arg1[%c34] : memref<68xf32, #tpu.memory_space<smem>>
    %205 = vector.broadcast %204 : f32 to vector<1x128xf32>
    %206 = arith.mulf %50, %205 : vector<1x128xf32>
    %207 = arith.addf %203, %206 : vector<1x128xf32>
    %c40 = arith.constant 40 : index
    %208 = memref.load %arg1[%c40] : memref<68xf32, #tpu.memory_space<smem>>
    %209 = vector.broadcast %208 : f32 to vector<1x128xf32>
    %210 = arith.mulf %73, %209 : vector<1x128xf32>
    %211 = arith.addf %207, %210 : vector<1x128xf32>
    %c46 = arith.constant 46 : index
    %212 = memref.load %arg1[%c46] : memref<68xf32, #tpu.memory_space<smem>>
    %213 = vector.broadcast %212 : f32 to vector<1x128xf32>
    %214 = arith.mulf %96, %213 : vector<1x128xf32>
    %215 = arith.addf %211, %214 : vector<1x128xf32>
    %c52 = arith.constant 52 : index
    %216 = memref.load %arg1[%c52] : memref<68xf32, #tpu.memory_space<smem>>
    %217 = vector.broadcast %216 : f32 to vector<1x128xf32>
    %218 = arith.mulf %119, %217 : vector<1x128xf32>
    %219 = arith.addf %215, %218 : vector<1x128xf32>
    %c58 = arith.constant 58 : index
    %220 = memref.load %arg1[%c58] : memref<68xf32, #tpu.memory_space<smem>>
    %221 = vector.broadcast %220 : f32 to vector<1x128xf32>
    %222 = arith.addf %219, %221 : vector<1x128xf32>
    %223 = arith.negf %222 : vector<1x128xf32>
    %224 = math.exp %223 : vector<1x128xf32>
    %cst_9 = arith.constant 1.000000e+00 : f32
    %225 = vector.broadcast %cst_9 : f32 to vector<1x128xf32>
    %226 = arith.addf %225, %224 : vector<1x128xf32>
    %227 = arith.divf %225, %226 : vector<1x128xf32>
    %c29 = arith.constant 29 : index
    %228 = memref.load %arg1[%c29] : memref<68xf32, #tpu.memory_space<smem>>
    %229 = vector.broadcast %228 : f32 to vector<1x128xf32>
    %230 = arith.mulf %27, %229 : vector<1x128xf32>
    %c35 = arith.constant 35 : index
    %231 = memref.load %arg1[%c35] : memref<68xf32, #tpu.memory_space<smem>>
    %232 = vector.broadcast %231 : f32 to vector<1x128xf32>
    %233 = arith.mulf %50, %232 : vector<1x128xf32>
    %234 = arith.addf %230, %233 : vector<1x128xf32>
    %c41 = arith.constant 41 : index
    %235 = memref.load %arg1[%c41] : memref<68xf32, #tpu.memory_space<smem>>
    %236 = vector.broadcast %235 : f32 to vector<1x128xf32>
    %237 = arith.mulf %73, %236 : vector<1x128xf32>
    %238 = arith.addf %234, %237 : vector<1x128xf32>
    %c47 = arith.constant 47 : index
    %239 = memref.load %arg1[%c47] : memref<68xf32, #tpu.memory_space<smem>>
    %240 = vector.broadcast %239 : f32 to vector<1x128xf32>
    %241 = arith.mulf %96, %240 : vector<1x128xf32>
    %242 = arith.addf %238, %241 : vector<1x128xf32>
    %c53 = arith.constant 53 : index
    %243 = memref.load %arg1[%c53] : memref<68xf32, #tpu.memory_space<smem>>
    %244 = vector.broadcast %243 : f32 to vector<1x128xf32>
    %245 = arith.mulf %119, %244 : vector<1x128xf32>
    %246 = arith.addf %242, %245 : vector<1x128xf32>
    %c59 = arith.constant 59 : index
    %247 = memref.load %arg1[%c59] : memref<68xf32, #tpu.memory_space<smem>>
    %248 = vector.broadcast %247 : f32 to vector<1x128xf32>
    %249 = arith.addf %246, %248 : vector<1x128xf32>
    %250 = arith.negf %249 : vector<1x128xf32>
    %251 = math.exp %250 : vector<1x128xf32>
    %cst_10 = arith.constant 1.000000e+00 : f32
    %252 = vector.broadcast %cst_10 : f32 to vector<1x128xf32>
    %253 = arith.addf %252, %251 : vector<1x128xf32>
    %254 = arith.divf %252, %253 : vector<1x128xf32>
    %c30 = arith.constant 30 : index
    %255 = memref.load %arg1[%c30] : memref<68xf32, #tpu.memory_space<smem>>
    %256 = vector.broadcast %255 : f32 to vector<1x128xf32>
    %257 = arith.mulf %27, %256 : vector<1x128xf32>
    %c36 = arith.constant 36 : index
    %258 = memref.load %arg1[%c36] : memref<68xf32, #tpu.memory_space<smem>>
    %259 = vector.broadcast %258 : f32 to vector<1x128xf32>
    %260 = arith.mulf %50, %259 : vector<1x128xf32>
    %261 = arith.addf %257, %260 : vector<1x128xf32>
    %c42 = arith.constant 42 : index
    %262 = memref.load %arg1[%c42] : memref<68xf32, #tpu.memory_space<smem>>
    %263 = vector.broadcast %262 : f32 to vector<1x128xf32>
    %264 = arith.mulf %73, %263 : vector<1x128xf32>
    %265 = arith.addf %261, %264 : vector<1x128xf32>
    %c48 = arith.constant 48 : index
    %266 = memref.load %arg1[%c48] : memref<68xf32, #tpu.memory_space<smem>>
    %267 = vector.broadcast %266 : f32 to vector<1x128xf32>
    %268 = arith.mulf %96, %267 : vector<1x128xf32>
    %269 = arith.addf %265, %268 : vector<1x128xf32>
    %c54 = arith.constant 54 : index
    %270 = memref.load %arg1[%c54] : memref<68xf32, #tpu.memory_space<smem>>
    %271 = vector.broadcast %270 : f32 to vector<1x128xf32>
    %272 = arith.mulf %119, %271 : vector<1x128xf32>
    %273 = arith.addf %269, %272 : vector<1x128xf32>
    %c60 = arith.constant 60 : index
    %274 = memref.load %arg1[%c60] : memref<68xf32, #tpu.memory_space<smem>>
    %275 = vector.broadcast %274 : f32 to vector<1x128xf32>
    %276 = arith.addf %273, %275 : vector<1x128xf32>
    %277 = arith.negf %276 : vector<1x128xf32>
    %278 = math.exp %277 : vector<1x128xf32>
    %cst_11 = arith.constant 1.000000e+00 : f32
    %279 = vector.broadcast %cst_11 : f32 to vector<1x128xf32>
    %280 = arith.addf %279, %278 : vector<1x128xf32>
    %281 = arith.divf %279, %280 : vector<1x128xf32>
    %c61 = arith.constant 61 : index
    %282 = memref.load %arg1[%c61] : memref<68xf32, #tpu.memory_space<smem>>
    %283 = vector.broadcast %282 : f32 to vector<1x128xf32>
    %284 = arith.mulf %146, %283 : vector<1x128xf32>
    %c62 = arith.constant 62 : index
    %285 = memref.load %arg1[%c62] : memref<68xf32, #tpu.memory_space<smem>>
    %286 = vector.broadcast %285 : f32 to vector<1x128xf32>
    %287 = arith.mulf %173, %286 : vector<1x128xf32>
    %288 = arith.addf %284, %287 : vector<1x128xf32>
    %c63 = arith.constant 63 : index
    %289 = memref.load %arg1[%c63] : memref<68xf32, #tpu.memory_space<smem>>
    %290 = vector.broadcast %289 : f32 to vector<1x128xf32>
    %291 = arith.mulf %200, %290 : vector<1x128xf32>
    %292 = arith.addf %288, %291 : vector<1x128xf32>
    %c64 = arith.constant 64 : index
    %293 = memref.load %arg1[%c64] : memref<68xf32, #tpu.memory_space<smem>>
    %294 = vector.broadcast %293 : f32 to vector<1x128xf32>
    %295 = arith.mulf %227, %294 : vector<1x128xf32>
    %296 = arith.addf %292, %295 : vector<1x128xf32>
    %c65 = arith.constant 65 : index
    %297 = memref.load %arg1[%c65] : memref<68xf32, #tpu.memory_space<smem>>
    %298 = vector.broadcast %297 : f32 to vector<1x128xf32>
    %299 = arith.mulf %254, %298 : vector<1x128xf32>
    %300 = arith.addf %296, %299 : vector<1x128xf32>
    %c66 = arith.constant 66 : index
    %301 = memref.load %arg1[%c66] : memref<68xf32, #tpu.memory_space<smem>>
    %302 = vector.broadcast %301 : f32 to vector<1x128xf32>
    %303 = arith.mulf %281, %302 : vector<1x128xf32>
    %304 = arith.addf %300, %303 : vector<1x128xf32>
    %c67 = arith.constant 67 : index
    %305 = memref.load %arg1[%c67] : memref<68xf32, #tpu.memory_space<smem>>
    %306 = vector.broadcast %305 : f32 to vector<1x128xf32>
    %307 = arith.addf %304, %306 : vector<1x128xf32>
    %308 = arith.negf %307 : vector<1x128xf32>
    %309 = math.exp %308 : vector<1x128xf32>
    %cst_12 = arith.constant 1.000000e+00 : f32
    %310 = vector.broadcast %cst_12 : f32 to vector<1x128xf32>
    %311 = arith.addf %310, %309 : vector<1x128xf32>
    %312 = arith.divf %310, %311 : vector<1x128xf32>
    %c0_13 = arith.constant 0 : index
    %c0_14 = arith.constant 0 : index
    %313 = vector.load %arg3[%c0_13, %c0_14] : memref<1x128xf32, #tpu.memory_space<vmem>>, vector<1x128xf32>
    tpu.vector_store %arg3[%c0_13, %c0_14], %312 {strides = array<i32>} : memref<1x128xf32, #tpu.memory_space<vmem>>, vector<1x128xf32>,
    return
  }
  func.func @transform_0(%arg0: i32) -> i32 {
    %c0_i32 = arith.constant 0 : i32
    %c0_i32_0 = arith.constant 0 : i32
    return %c0_i32 : i32
  }
  func.func @transform_1(%arg0: i32) -> (i32, i32) {
    %c0_i32 = arith.constant 0 : i32
    %c0_i32_0 = arith.constant 0 : i32
    return %c0_i32, %arg0 : i32, i32
  }
  func.func @transform_2(%arg0: i32) -> (i32, i32) {
    %c0_i32 = arith.constant 0 : i32
    %c0_i32_0 = arith.constant 0 : i32
    return %c0_i32, %arg0 : i32, i32
  }
}

</mosaic_0001>

<bundles_post_ra>
// kernel: tpu_custom_call.1
= control target key start
LH: loop header
LB: loop body
LE: loop exit
PB: predicated region body
PF: predicated region fallthrough
CT: control target
= control target key end

     0   :  { %7 = vsyncpa [#allocation5], 0  ;;  %s788_s0 = inlined_call_operand.hbm [shape: f32[68], index: 0, kind: input, shape index: {}]   ;;  %s789_s1 = inlined_call_operand.hbm [shape: f32[4,128], index: 1, kind: input, shape index: {}]   ;;  %s790_s2 = inlined_call_operand.hbm [shape: f32[1,128], index: 2, kind: output, shape index: {}]  }
   0x1   :  { %8 = vsyncpa [#allocation3], 0 }
   0x2   :  { %9 = vsyncpa [#allocation4], 0  ;;  %s602_s9 = smov [#allocation2]   ;;  %s603_s12 = smov [#allocation6]  }
   0x3   :  { %17 = dma.hbm_to_smem %s788_s0, 16, %s602_s9, [#allocation5]  }
   0x4   :  { %s24_s13 = sshll.u32 %s603_s12, 4  ;;  %s25_s13 = int_to_ptr.vmem [resolvable:$true] %s24_s13 }
   0x5   :  { %s564_s14 = scalar_lea.vmem %s25_s13, 64  ;;  %p569_p1 = scmp.lt.s32.totalorder %s25_s13, %s25_s13 }
   0x6   :  { %p565_p0 = scmp.ne.s32.totalorder %s25_s13, %s564_s14  ;;  %p570_p2 = scmp.lt.s32.totalorder %s564_s14, %s564_s14 }
   0x8   :  { %p571_p3 = por %p570_p2, %p569_p1 }
   0xa   :  { %p572_p4 = pnand %p571_p3, %p565_p0 }
   0xc   :  { %575 = shalt.err (!%p572_p4)
}
   0xd   :  { %27 = dma.hbm_to_vmem [thread:$0]  %s789_s1, 64, %s25_s13, [#allocation3]  }
   0xe   :  { %596 = dma.done.wait [#allocation5], 16  }
   0xf   :  { %597 = vsyncadd [#allocation5], 4294967280 }
  0x10   :  { %598 = dma.done.wait [#allocation3], 64  }
  0x11   :  { %599 = vsyncadd [#allocation3], 4294967232 }
  0x12   :  { %34 = sfence }
  0x13   :  { %s36_s0 = sld [smem:[#allocation2]]  ;;  %v628_v0 = vld [vmem:[#allocation6] sm:$0xf] }
  0x14   :  { %s418_s17 = sld [smem:[#allocation2 + $0x5]] }
  0x15   :  { %s419_s18 = sld [smem:[#allocation2 + $0xa]] }
  0x16   :  { %s420_s19 = sld [smem:[#allocation2 + $0xf]] }
  0x17   :  { %s626_s20 = sld [smem:[#allocation2 + $0x14]] }
  0x18   :  { %s423_s21 = sld [smem:[#allocation2 + $0x1]] }
  0x19   :  { %v37_v1 = vstv %s36_s0  ;;  %s424_s22 = sld [smem:[#allocation2 + $0x6]] }
  0x1a   :  { %v40_v2 = vstv %s418_s17  ;;  %s425_s23 = sld [smem:[#allocation2 + $0xb]]  ;;  %v38_v3 = vmul.f32 %v37_v1, %v628_v0 }
  0x1b   :  { %v41_v4 = vmul.f32 %v40_v2, %v628_v0  ;;  %v47_v5 = vstv %s419_s18  ;;  %s426_s1 = sld [smem:[#allocation2 + $0x10]] }
  0x1c   :  { %v48_v6 = vmul.f32 %v47_v5, %v628_v0  ;;  %v54_v7 = vstv %s420_s19  ;;  %s633_s24 = sld [smem:[#allocation2 + $0x15]] }
  0x1d   :  { %v43_v8 = vrot.slane %v41_v4, 1  ;;  %v55_v9 = vmul.f32 %v54_v7, %v628_v0  ;;  %s429_s25 = sld [smem:[#allocation2 + $0x2]]  ;;  %v61_v21 = vstv %s626_s20 }
  0x1e   :  { %v50_v10 = vrot.slane %v48_v6, 2  ;;  %v70_v11 = vstv %s423_s21  ;;  %s430_s26 = sld [smem:[#allocation2 + $0x7]] }
  0x1f   :  { %v45_v12 = vadd.f32 %v43_v8, %v38_v3  ;;  %v57_v13 = vrot.slane %v55_v9, 3  ;;  %v73_v14 = vstv %s424_s22  ;;  %s431_s27 = sld [smem:[#allocation2 + $0xc]]  ;;  %v71_v15 = vmul.f32 %v70_v11, %v628_v0 }
  0x20   :  { %v74_v16 = vmul.f32 %v73_v14, %v628_v0  ;;  %v80_v17 = vstv %s425_s23  ;;  %s432_s28 = sld [smem:[#allocation2 + $0x11]] }
  0x21   :  { %v52_v18 = vadd.f32 %v50_v10, %v45_v12  ;;  %v81_v19 = vmul.f32 %v80_v17, %v628_v0  ;;  %v87_v20 = vstv %s426_s1  ;;  %s639_s29 = sld [smem:[#allocation2 + $0x16]] }
  0x22   :  { %v76_v22 = vrot.slane %v74_v16, 1  ;;  %v88_v23 = vmul.f32 %v87_v20, %v628_v0  ;;  %s643_s30 = sld [smem:[#allocation2 + $0x3]]  ;;  %v94_v38 = vstv %s633_s24 }
  0x23   :  { %v59_v24 = vadd.f32 %v57_v13, %v52_v18  ;;  %v83_v25 = vrot.slane %v81_v19, 2  ;;  %v103_v26 = vstv %s429_s25  ;;  %s645_s3 = sld [smem:[#allocation2 + $0x8]] }
  0x24   :  { %v78_v27 = vadd.f32 %v76_v22, %v71_v15  ;;  %v90_v28 = vrot.slane %v88_v23, 3  ;;  %v106_v29 = vstv %s430_s26  ;;  %s437_s4 = sld [smem:[#allocation2 + $0xd]]  ;;  %v104_v31 = vmul.f32 %v103_v26, %v628_v0 }
  0x25   :  { %v62_v30 = vadd.f32 %v61_v21, %v59_v24  ;;  %v107_v32 = vmul.f32 %v106_v29, %v628_v0  ;;  %v113_v33 = vstv %s431_s27  ;;  %s438_s5 = sld [smem:[#allocation2 + $0x12]] }
  0x26   :  { %v85_v34 = vadd.f32 %v83_v25, %v78_v27  ;;  %v114_v35 = vmul.f32 %v113_v33, %v628_v0  ;;  %v120_v36 = vstv %s432_s28  ;;  %s650_s6 = sld [smem:[#allocation2 + $0x17]] }
  0x27   :  { %v422_v37 = vmul.f32 -1.442695, %v62_v30  ;;  %v109_v39 = vrot.slane %v107_v32, 1  ;;  %v121_v40 = vmul.f32 %v120_v36, %v628_v0  ;;  %s441_s7 = sld [smem:[#allocation2 + $0x4]]  ;;  %v127_v55 = vstv %s639_s29 }
  0x28   :  { %v92_v41 = vadd.f32 %v90_v28, %v85_v34  ;;  %v116_v42 = vrot.slane %v114_v35, 2  ;;  %v136_v43 = vstv %s643_s30  ;;  %s442_s8 = sld [smem:[#allocation2 + $0x9]] }
  0x29   :  { %500 = vpow2.f32 %v422_v37  ;;  %v111_v44 = vadd.f32 %v109_v39, %v104_v31  ;;  %v123_v45 = vrot.slane %v121_v40, 3  ;;  %s443_s9 = sld [smem:[#allocation2 + $0xe]]  ;;  %v137_v47 = vmul.f32 %v136_v43, %v628_v0 }
  0x2a   :  { %v95_v46 = vadd.f32 %v94_v38, %v92_v41  ;;  %v139_v48 = vstv %s645_s3  ;;  %v146_v49 = vstv %s437_s4  ;;  %s444_s10 = sld [smem:[#allocation2 + $0x13]] }
  0x2b   :  { %v118_v50 = vadd.f32 %v116_v42, %v111_v44  ;;  %v140_v51 = vmul.f32 %v139_v48, %v628_v0  ;;  %v147_v52 = vmul.f32 %v146_v49, %v628_v0  ;;  %v153_v53 = vstv %s438_s5  ;;  %s661_s11 = sld [smem:[#allocation2 + $0x18]] }
  0x2c   :  { %v428_v54 = vmul.f32 -1.442695, %v95_v46  ;;  %v154_v56 = vmul.f32 %v153_v53, %v628_v0  ;;  %s663_s12 = sld [smem:[#allocation2 + $0x19]]  ;;  %v160_v11 = vstv %s650_s6 }
  0x2d   :  { %v125_v57 = vadd.f32 %v123_v45, %v118_v50  ;;  %v142_v58 = vrot.slane %v140_v51, 1  ;;  %v149_v59 = vrot.slane %v147_v52, 2  ;;  %v169_v60 = vstv %s441_s7  ;;  %s666_s13 = sld [smem:[#allocation2 + $0x1f]] }
  0x2e   :  { %502 = vpow2.f32 %v428_v54  ;;  %v156_v61 = vrot.slane %v154_v56, 3  ;;  %v170_v62 = vmul.f32 %v169_v60, %v628_v0  ;;  %v172_v63 = vstv %s442_s8  ;;  %s669_s14 = sld [smem:[#allocation2 + $0x25]] }
  0x2f   :  { %v128_v1 = vadd.f32 %v127_v55, %v125_v57  ;;  %v144_v2 = vadd.f32 %v142_v58, %v137_v47  ;;  %v173_v3 = vmul.f32 %v172_v63, %v628_v0  ;;  %v179_v4 = vstv %s443_s9  ;;  %s672_s15 = sld [smem:[#allocation2 + $0x2b]] }
  0x30   :  { %v180_v5 = vmul.f32 %v179_v4, %v628_v0  ;;  %v186_v6 = vstv %s444_s10  ;;  %s675_s16 = sld [smem:[#allocation2 + $0x31]] }
  0x31   :  { %v434_v7 = vmul.f32 -1.442695, %v128_v1  ;;  %v151_v8 = vadd.f32 %v149_v59, %v144_v2  ;;  %v175_v9 = vrot.slane %v173_v3, 1  ;;  %v187_v10 = vmul.f32 %v186_v6, %v628_v0  ;;  %s678_s0 = sld [smem:[#allocation2 + $0x37]] }
  0x32   :  { %v182_v12 = vrot.slane %v180_v5, 2  ;;  %s680_s17 = sld [smem:[#allocation2 + $0x1a]]  ;;  %v193_v0 = vstv %s661_s11  ;;  %v202_v30 = vstv %s663_s12 }
  0x33   :  { %504 = vpow2.f32 %v434_v7  ;;  %v158_v13 = vadd.f32 %v156_v61, %v151_v8  ;;  %v177_v14 = vadd.f32 %v175_v9, %v170_v62  ;;  %v189_v15 = vrot.slane %v187_v10, 3  ;;  %s682_s18 = sld [smem:[#allocation2 + $0x20]] }
  0x34   :  { %s684_s19 = sld [smem:[#allocation2 + $0x26]]  ;;  %v205_v31 = vstv %s666_s13  ;;  %v209_v32 = vstv %s669_s14 }
  0x35   :  { %v161_v16 = vadd.f32 %v160_v11, %v158_v13  ;;  %v184_v17 = vadd.f32 %v182_v12, %v177_v14  ;;  %s687_s20 = sld [smem:[#allocation2 + $0x2c]]  ;;  %v213_v33 = vstv %s672_s15 }
  0x36   :  { %v501_v18 = vpop.eup %500  ;;  %s689_s21 = sld [smem:[#allocation2 + $0x32]]  ;;  %v217_v35 = vstv %s675_s16 }
  0x37   :  { %v66_v19 = vadd.f32 1.0, %v501_v18  ;;  %v440_v20 = vmul.f32 -1.442695, %v161_v16  ;;  %v191_v21 = vadd.f32 %v189_v15, %v184_v17  ;;  %s691_s22 = sld [smem:[#allocation2 + $0x38]]  ;;  %v221_v38 = vstv %s678_s0 }
  0x38   :  { %s693_s23 = sld [smem:[#allocation2 + $0x1b]]  ;;  %v230_v36 = vstv %s680_s17 }
  0x39   :  { %506 = vrcp.f32 %v66_v19  ;;  %v194_v22 = vadd.f32 %v193_v0, %v191_v21  ;;  %s695_s1 = sld [smem:[#allocation2 + $0x21]]  ;;  %v233_v39 = vstv %s682_s18 }
  0x3a   :  { %508 = vpow2.f32 %v440_v20  ;;  %s697_s24 = sld [smem:[#allocation2 + $0x27]]  ;;  %v237_v40 = vstv %s684_s19 }
  0x3b   :  { %v503_v23 = vpop.eup %502  ;;  %v446_v24 = vmul.f32 -1.442695, %v194_v22  ;;  %s699_s25 = sld [smem:[#allocation2 + $0x2d]]  ;;  %v241_v55 = vstv %s687_s20 }
  0x3c   :  { %v99_v25 = vadd.f32 1.0, %v503_v23  ;;  %s701_s26 = sld [smem:[#allocation2 + $0x33]]  ;;  %v245_v58 = vstv %s689_s21 }
  0x3d   :  { %510 = vpow2.f32 %v446_v24  ;;  %s703_s27 = sld [smem:[#allocation2 + $0x39]]  ;;  %v249_v59 = vstv %s691_s22 }
  0x3e   :  { %512 = vrcp.f32 %v99_v25  ;;  %s705_s28 = sld [smem:[#allocation2 + $0x1c]]  ;;  %v258_v37 = vstv %s693_s23 }
  0x3f   :  { %s707_s29 = sld [smem:[#allocation2 + $0x22]]  ;;  %v261_v41 = vstv %s695_s1  ;;  %s604_s1 = smov [#allocation7]  }
  0x40   :  { %v505_v26 = vpop.eup %504  ;;  %s709_s30 = sld [smem:[#allocation2 + $0x28]]  ;;  %v265_v60 = vstv %s697_s24  ;;  %s408_s24 = sshll.u32 %s604_s1, 4  ;;  %s409_s24 = int_to_ptr.vmem [resolvable:$true] %s408_s24 }
  0x41   :  { %v132_v27 = vadd.f32 1.0, %v505_v26  ;;  %s711_s3 = sld [smem:[#allocation2 + $0x2e]]  ;;  %v269_v61 = vstv %s699_s25  ;;  %s576_s25 = scalar_lea.vmem %s409_s24, 16 }
  0x42   :  { %s713_s4 = sld [smem:[#allocation2 + $0x34]]  ;;  %v273_v16 = vstv %s701_s26  ;;  %p577_p5 = scmp.ne.s32.totalorder %s409_s24, %s576_s25 }
  0x43   :  { %514 = vrcp.f32 %v132_v27  ;;  %s715_s5 = sld [smem:[#allocation2 + $0x1d]]  ;;  %v277_v17 = vstv %s703_s27  ;;  %s580_s26 = scalar_lea.vmem %s409_s24, 32 }
  0x44   :  { %s717_s6 = sld [smem:[#allocation2 + $0x23]]  ;;  %v286_v44 = vstv %s705_s28  ;;  %p581_p6 = scmp.lt.s32.totalorder %s409_s24, %s409_s24 }
  0x45   :  { %s719_s7 = sld [smem:[#allocation2 + $0x3a]]  ;;  %v289_v45 = vstv %s707_s29  ;;  %p582_p7 = scmp.lt.s32.totalorder %s580_s26, %s576_s25 }
  0x46   :  { %v507_v28 = vpop.eup %506  ;;  %s725_s8 = sld [smem:[#allocation2 + $0x29]]  ;;  %v293_v62 = vstv %s709_s30 }
  0x47   :  { %v509_v29 = vpop.eup %508  ;;  %s730_s9 = sld [smem:[#allocation2 + $0x2f]]  ;;  %v203_v43 = vmul.f32 %v507_v28, %v202_v30  ;;  %v231_v48 = vmul.f32 %v507_v28, %v230_v36  ;;  %v259_v49 = vmul.f32 %v507_v28, %v258_v37  ;;  %v287_v56 = vmul.f32 %v507_v28, %v286_v44  ;;  %p583_p8 = por %p582_p7, %p581_p6 }
  0x48   :  { %v165_v34 = vadd.f32 1.0, %v509_v29  ;;  %s736_s10 = sld [smem:[#allocation2 + $0x35]]  ;;  %v297_v19 = vstv %s711_s3  ;;  %v301_v20 = vstv %s713_s4 }
  0x49   :  { %s740_s11 = sld [smem:[#allocation2 + $0x1e]]  ;;  %v314_v50 = vstv %s715_s5  ;;  %p584_p9 = pnand %p583_p8, %p577_p5 }
  0x4a   :  { %v511_v42 = vpop.eup %510  ;;  %516 = vrcp.f32 %v165_v34  ;;  %s743_s12 = sld [smem:[#allocation2 + $0x24]]  ;;  %v317_v54 = vstv %s717_s6  ;;  %v315_v63 = vmul.f32 %v507_v28, %v314_v50 }
  0x4b   :  { %v513_v46 = vpop.eup %512  ;;  %v198_v47 = vadd.f32 1.0, %v511_v42  ;;  %s746_s13 = sld [smem:[#allocation2 + $0x2a]]  ;;  %v305_v21 = vstv %s719_s7 }
  0x4c   :  { %v206_v51 = vmul.f32 %v513_v46, %v205_v31  ;;  %v234_v52 = vmul.f32 %v513_v46, %v233_v39  ;;  %v262_v53 = vmul.f32 %v513_v46, %v261_v41  ;;  %v290_v57 = vmul.f32 %v513_v46, %v289_v45  ;;  %s749_s14 = sld [smem:[#allocation2 + $0x3b]] }
  0x4d   :  { %518 = vrcp.f32 %v198_v47  ;;  %s755_s17 = sld [smem:[#allocation2 + $0x30]]  ;;  %v318_v1 = vmul.f32 %v513_v46, %v317_v54  ;;  %v321_v2 = vstv %s725_s8  ;;  %v325_v25 = vstv %s730_s9 }
  0x4e   :  { %s759_s18 = sld [smem:[#allocation2 + $0x36]]  ;;  %v207_v4 = vadd.f32 %v206_v51, %v203_v43  ;;  %v235_v5 = vadd.f32 %v234_v52, %v231_v48  ;;  %v263_v6 = vadd.f32 %v262_v53, %v259_v49  ;;  %v291_v11 = vadd.f32 %v290_v57, %v287_v56 }
  0x4f   :  { %v342_v7 = vstv %s740_s11  ;;  %s762_s19 = sld [smem:[#allocation2 + $0x3c]]  ;;  %v319_v18 = vadd.f32 %v318_v1, %v315_v63  ;;  %v329_v34 = vstv %s736_s10 }
  0x50   :  { %v515_v3 = vpop.eup %514  ;;  %v343_v13 = vmul.f32 %v507_v28, %v342_v7  ;;  %v345_v14 = vstv %s743_s12  ;;  %s489_s15 = sld [smem:[#allocation2 + $0x3d]] }
  0x51   :  { %v210_v8 = vmul.f32 %v515_v3, %v209_v32  ;;  %v238_v9 = vmul.f32 %v515_v3, %v237_v40  ;;  %v266_v10 = vmul.f32 %v515_v3, %v265_v60  ;;  %v294_v12 = vmul.f32 %v515_v3, %v293_v62  ;;  %s490_s16 = sld [smem:[#allocation2 + $0x3e]] }
  0x52   :  { %v349_v15 = vstv %s746_s13  ;;  %v322_v0 = vmul.f32 %v515_v3, %v321_v2  ;;  %v346_v22 = vmul.f32 %v513_v46, %v345_v14  ;;  %v333_v36 = vstv %s749_s14  ;;  %s491_s0 = sld [smem:[#allocation2 + $0x3f]] }
  0x53   :  { %v211_v23 = vadd.f32 %v210_v8, %v207_v4  ;;  %v239_v24 = vadd.f32 %v238_v9, %v235_v5  ;;  %v350_v26 = vmul.f32 %v515_v3, %v349_v15  ;;  %v267_v27 = vadd.f32 %v266_v10, %v263_v6  ;;  %s492_s20 = sld [smem:[#allocation2 + $0x40]] }
  0x54   :  { %v295_v28 = vadd.f32 %v294_v12, %v291_v11  ;;  %v347_v29 = vadd.f32 %v346_v22, %v343_v13  ;;  %v353_v30 = vstv %s755_s17  ;;  %v323_v32 = vadd.f32 %v322_v0, %v319_v18  ;;  %s493_s21 = sld [smem:[#allocation2 + $0x41]] }
  0x55   :  { %v357_v37 = vstv %s759_s18  ;;  %v361_v46 = vstv %s762_s19  ;;  %s494_s22 = sld [smem:[#allocation2 + $0x42]] }
  0x56   :  { %v351_v44 = vadd.f32 %v350_v26, %v347_v29  ;;  %s495_s23 = sld [smem:[#allocation2 + $0x43]] }
  0x57   :  { %v517_v31 = vpop.eup %516 }
  0x58   :  { %v214_v39 = vmul.f32 %v517_v31, %v213_v33  ;;  %v242_v40 = vmul.f32 %v517_v31, %v241_v55  ;;  %v270_v41 = vmul.f32 %v517_v31, %v269_v61  ;;  %v298_v42 = vmul.f32 %v517_v31, %v297_v19 }
  0x59   :  { %v326_v43 = vmul.f32 %v517_v31, %v325_v25  ;;  %v354_v45 = vmul.f32 %v517_v31, %v353_v30  ;;  %v377_v26 = vstv %s491_s0  ;;  %v381_v29 = vstv %s492_s20 }
  0x5a   :  { %v519_v47 = vpop.eup %518  ;;  %v215_v48 = vadd.f32 %v214_v39, %v211_v23  ;;  %v243_v49 = vadd.f32 %v242_v40, %v239_v24  ;;  %v271_v50 = vadd.f32 %v270_v41, %v267_v27  ;;  %v299_v51 = vadd.f32 %v298_v42, %v295_v28 }
  0x5b   :  { %v218_v52 = vmul.f32 %v519_v47, %v217_v35  ;;  %v246_v53 = vmul.f32 %v519_v47, %v245_v58  ;;  %v274_v54 = vmul.f32 %v519_v47, %v273_v16  ;;  %v302_v56 = vmul.f32 %v519_v47, %v301_v20 }
  0x5c   :  { %v327_v33 = vadd.f32 %v326_v43, %v323_v32  ;;  %v330_v55 = vmul.f32 %v519_v47, %v329_v34  ;;  %v355_v57 = vadd.f32 %v354_v45, %v351_v44  ;;  %v358_v60 = vmul.f32 %v519_v47, %v357_v37 }
  0x5d   :  { %v219_v61 = vadd.f32 %v218_v52, %v215_v48  ;;  %v247_v62 = vadd.f32 %v246_v53, %v243_v49  ;;  %v275_v63 = vadd.f32 %v274_v54, %v271_v50  ;;  %v303_v1 = vadd.f32 %v302_v56, %v299_v51 }
  0x5e   :  { %v331_v2 = vadd.f32 %v330_v55, %v327_v33  ;;  %v359_v3 = vadd.f32 %v358_v60, %v355_v57  ;;  %v370_v23 = vstv %s489_s15  ;;  %v373_v24 = vstv %s490_s16 }
  0x5f   :  { %v222_v4 = vadd.f32 %v221_v38, %v219_v61  ;;  %v250_v5 = vadd.f32 %v249_v59, %v247_v62  ;;  %v278_v6 = vadd.f32 %v277_v17, %v275_v63  ;;  %v306_v7 = vadd.f32 %v305_v21, %v303_v1 }
  0x60   :  { %v334_v35 = vadd.f32 %v333_v36, %v331_v2  ;;  %v362_v58 = vadd.f32 %v361_v46, %v359_v3  ;;  %v385_v36 = vstv %s493_s21  ;;  %v389_v42 = vstv %s494_s22 }
  0x61   :  { %v453_v8 = vmul.f32 -1.442695, %v222_v4  ;;  %v460_v9 = vmul.f32 -1.442695, %v250_v5  ;;  %v467_v10 = vmul.f32 -1.442695, %v278_v6  ;;  %v393_v48 = vstv %s495_s23 }
  0x62   :  { %v474_v11 = vmul.f32 -1.442695, %v306_v7  ;;  %v481_v12 = vmul.f32 -1.442695, %v334_v35  ;;  %v488_v13 = vmul.f32 -1.442695, %v362_v58 }
  0x63   :  { %520 = vpow2.f32 %v453_v8 }
  0x64   :  { %522 = vpow2.f32 %v460_v9 }
  0x65   :  { %524 = vpow2.f32 %v467_v10 }
  0x66   :  { %526 = vpow2.f32 %v474_v11 }
  0x67   :  { %528 = vpow2.f32 %v481_v12 }
  0x68   :  { %530 = vpow2.f32 %v488_v13 }
  0x70   :  { %v521_v14 = vpop.eup %520 }
  0x71   :  { %v523_v38 = vpop.eup %522  ;;  %v226_v15 = vadd.f32 1.0, %v521_v14 }
  0x72   :  { %v525_v59 = vpop.eup %524  ;;  %v254_v16 = vadd.f32 1.0, %v523_v38 }
  0x73   :  { %v527_v17 = vpop.eup %526  ;;  %532 = vrcp.f32 %v226_v15  ;;  %v282_v18 = vadd.f32 1.0, %v525_v59 }
  0x74   :  { %v529_v0 = vpop.eup %528  ;;  %534 = vrcp.f32 %v254_v16  ;;  %v310_v19 = vadd.f32 1.0, %v527_v17 }
  0x75   :  { %v531_v20 = vpop.eup %530  ;;  %536 = vrcp.f32 %v282_v18  ;;  %v338_v21 = vadd.f32 1.0, %v529_v0 }
  0x76   :  { %538 = vrcp.f32 %v310_v19  ;;  %v366_v22 = vadd.f32 1.0, %v531_v20 }
  0x77   :  { %540 = vrcp.f32 %v338_v21 }
  0x78   :  { %542 = vrcp.f32 %v366_v22 }
  0x80   :  { %v533_v25 = vpop.eup %532 }
  0x81   :  { %v535_v27 = vpop.eup %534  ;;  %v371_v28 = vmul.f32 %v533_v25, %v370_v23 }
  0x82   :  { %v537_v30 = vpop.eup %536  ;;  %v374_v31 = vmul.f32 %v535_v27, %v373_v24 }
  0x83   :  { %v539_v32 = vpop.eup %538  ;;  %v378_v34 = vmul.f32 %v537_v30, %v377_v26 }
  0x84   :  { %v541_v37 = vpop.eup %540  ;;  %v375_v39 = vadd.f32 %v374_v31, %v371_v28  ;;  %v382_v40 = vmul.f32 %v539_v32, %v381_v29 }
  0x85   :  { %v543_v41 = vpop.eup %542  ;;  %v386_v44 = vmul.f32 %v541_v37, %v385_v36 }
  0x86   :  { %v379_v43 = vadd.f32 %v378_v34, %v375_v39  ;;  %v390_v46 = vmul.f32 %v543_v41, %v389_v42 }
  0x88   :  { %v383_v45 = vadd.f32 %v382_v40, %v379_v43 }
  0x8a   :  { %v387_v47 = vadd.f32 %v386_v44, %v383_v45 }
  0x8c   :  { %v391_v49 = vadd.f32 %v390_v46, %v387_v47 }
  0x8e   :  { %v394_v50 = vadd.f32 %v393_v48, %v391_v49 }
  0x90   :  { %v496_v51 = vmul.f32 -1.442695, %v394_v50 }
  0x92   :  { %544 = vpow2.f32 %v496_v51 }
  0x9f   :  { %v545_v52 = vpop.eup %544 }
  0xa0   :  { %v398_v53 = vadd.f32 1.0, %v545_v52 }
  0xa2   :  { %546 = vrcp.f32 %v398_v53 }
  0xaf   :  { %v547_v54 = vpop.eup %546 }
  0xb0   :  { %401 = vst [vmem:[#allocation7] sm:$0x1] %v547_v54 }
  0xb1   :  { %587 = shalt.err (!%p584_p9)
}
  0xb2   :  { %411 = dma.vmem_to_hbm [thread:$0]  %s409_s24, 16, %s790_s2, [#allocation4]  }
  0xb3   :  { %600 = dma.done.wait [#allocation4], 16  }
  0xb4   :  { %601 = vsyncadd [#allocation4], 4294967280 }
  0xb5   :  { %415 = vsyncpa [#allocation3], 1 }
  0xb6   :  { %416 = vsyncpa [#allocation4], 1 }
  0xb7   :  { %417 = vsyncpa [#allocation5], 1 }

</bundles_post_ra>
